<compile_context>
chip_gen: v7x
topology: tpu7x:2x2x1
jax: 0.10.0
libtpu: 0.0.40
codegen_flags: <defaults>
</compile_context>

<pallas_src>
import numpy as np
import jax
import jax.numpy as jnp
from jax.experimental import pallas as pl
from jax.experimental.pallas import tpu as pltpu

MIN_VALUE = -0.4914
MAX_VALUE = 0.6558


def _make_kernel(cin_g, KH, OH, cout_g, OW_pad, min_value, max_value):
    def kernel(xp_ref, wb_ref, out_ref):
        # xp_ref : (1, cin_g, PH, W)              row-padded input channels of group g
        # wb_ref : (1, cin_g*KH, W, cout_g*OW_pad) banded (height-flipped) weights of group g
        # out_ref: (1, cout_g, OH, OW_pad)        cout_g output planes (lane-dense)
        acc = None
        for ci in range(cin_g):
            plane = xp_ref[0, ci].astype(jnp.bfloat16)      # (PH, W), one load + cast
            for kh in range(KH):
                rows = plane[kh:kh + OH, :]                 # (OH, W) sublane-only offset
                part = jnp.dot(rows, wb_ref[0, ci * KH + kh],
                               preferred_element_type=jnp.float32)
                acc = part if acc is None else acc + part   # first dot initializes acc
        # clamp_min then clamp_max (min < max, equivalent to clip)
        out = jnp.minimum(jnp.maximum(acc, min_value), max_value).astype(out_ref.dtype)
        for c in range(cout_g):
            out_ref[0, c] = out[:, c * OW_pad:(c + 1) * OW_pad]   # lane-aligned slice

    return kernel


def conv_transpose2d_clamp(x, w, *, groups, min_value=MIN_VALUE, max_value=MAX_VALUE):
    """x: (N, CIN, H, W) f32 NCHW.  w: (CIN, COUT//groups, KH, KW) PyTorch
    ConvTranspose2d weight layout.  stride=1, padding=0, no bias."""
    x = x.astype(jnp.float32)
    w = w.astype(jnp.float32)
    N, CIN, H, W = x.shape
    CIN_w, cout_g, KH, KW = w.shape
    assert CIN_w == CIN and CIN % groups == 0
    G = groups
    cin_g = CIN // G
    COUT = cout_g * G
    OH = H + KH - 1
    OW = W + KW - 1
    PH = H + 2 * (KH - 1)                      # only height is zero-padded
    OW_pad = ((OW + 127) // 128) * 128         # lane-dense output width

    # Height: transposed conv (stride 1) == correlation of row-padded input
    # with the height-flipped kernel.  Width: folded into a banded matrix.
    xp = jnp.pad(x, ((0, 0), (0, 0), (KH - 1, KH - 1), (0, 0)))     # (N, CIN, PH, W)

    # Banded weight over the UNPADDED width:
    #   wb[g, ci*KH+kh, w, c*OW_pad+ow] = w[g*cin_g+ci, c, KH-1-kh, ow-w]
    # for 0 <= ow-w < KW and ow < OW, else 0.
    w_idx = jnp.arange(W)[:, None]                                   # (W, 1)
    ow_idx = jnp.arange(OW_pad)[None, :]                             # (1, OW_pad)
    kw_idx = ow_idx - w_idx                                          # (W, OW_pad)
    valid = (kw_idx >= 0) & (kw_idx < KW) & (ow_idx < OW)
    kw_c = jnp.clip(kw_idx, 0, KW - 1)
    wg = w.reshape(G, cin_g, cout_g, KH, KW)
    wg_hflip = wg[:, :, :, ::-1, :]                                  # flip height only
    band = jnp.where(valid, wg_hflip[:, :, :, :, kw_c], 0.0)         # (G,cin_g,cout_g,KH,W,OW_pad)
    band = jnp.transpose(band, (0, 1, 3, 4, 2, 5))                   # (G,cin_g,KH,W,cout_g,OW_pad)
    wb = band.reshape(G, cin_g * KH, W, cout_g * OW_pad).astype(jnp.bfloat16)

    kernel = _make_kernel(cin_g, KH, OH, cout_g, OW_pad, min_value, max_value)

    out_padded = pl.pallas_call(
        kernel,
        out_shape=jax.ShapeDtypeStruct((N, COUT, OH, OW_pad), jnp.float32),
        grid_spec=pltpu.PrefetchScalarGridSpec(
            num_scalar_prefetch=0,
            # group axis OUTER, batch INNER -> wb block index constant across n,
            # so the dominant (weight) DMA is issued only G times, not G*N.
            grid=(G, N),
            in_specs=[
                pl.BlockSpec((1, cin_g, PH, W),
                             lambda g, n: (n, g, 0, 0)),
                pl.BlockSpec((1, cin_g * KH, W, cout_g * OW_pad),
                             lambda g, n: (g, 0, 0, 0)),
            ],
            out_specs=pl.BlockSpec((1, cout_g, OH, OW_pad),
                                   lambda g, n: (n, g, 0, 0)),
        ),
        compiler_params=pltpu.CompilerParams(
            dimension_semantics=("parallel", "parallel")),
    )(xp, wb)

    if OW == OW_pad:
        return out_padded
    return out_padded[:, :, :, :OW]


def _reference(x, w, groups, min_value, max_value):
    """Direct NumPy implementation of PyTorch ConvTranspose2d + clamp semantics."""
    x = np.asarray(x, np.float32)
    w = np.asarray(w, np.float32)
    N, CIN, H, W = x.shape
    _, cout_g, KH, KW = w.shape
    COUT = cout_g * groups
    cin_g = CIN // groups
    OH, OW = H + KH - 1, W + KW - 1
    out = np.zeros((N, COUT, OH, OW), np.float32)
    for co in range(COUT):
        g, co_l = co // cout_g, co % cout_g
        for ci in range(cin_g):
            cig = g * cin_g + ci
            for kh in range(KH):
                for kw in range(KW):
                    out[:, co, kh:kh + H, kw:kw + W] += x[:, cig] * w[cig, co_l, kh, kw]
    return np.clip(out, min_value, max_value)


if __name__ == "__main__":
    # small shapes consistent with the module's forward (grouped transposed
    # conv with kernel (3,16), stride 1, groups=2, no bias, then clamp)
    N, CIN, H, W = 2, 6, 8, 24
    GROUPS = 2
    COUT = 4
    KH, KW = 3, 16

    key = jax.random.PRNGKey(0)
    kx, kw_ = jax.random.split(key)
    x = jax.random.normal(kx, (N, CIN, H, W), dtype=jnp.float32)
    # PyTorch ConvTranspose2d weight shape: (in_channels, out_channels // groups, KH, KW)
    wgt = jax.random.normal(kw_, (CIN, COUT // GROUPS, KH, KW), dtype=jnp.float32) * 0.1

    out = conv_transpose2d_clamp(x, wgt, groups=GROUPS)
    out = jax.block_until_ready(out)

    ref = _reference(np.asarray(x), np.asarray(wgt), GROUPS, MIN_VALUE, MAX_VALUE)
    # bf16 weights / LHS on the MXU with f32 accumulation -> relaxed tolerance
    np.testing.assert_allclose(np.asarray(out), ref, rtol=2e-2, atol=2e-2)
    print("KERNEL_OK")
</pallas_src>

<mosaic_0001>
module attributes {stable_mosaic.version = 11 : i64} {
  func.func @kernel(%arg0: i32, %arg1: i32, %arg2: memref<1x3x12x24xf32, #tpu.memory_space<vmem>>, %arg3: memref<1x9x24x256xbf16, #tpu.memory_space<vmem>>, %arg4: memref<1x2x10x128xf32, #tpu.memory_space<vmem>>) attributes {dimension_semantics = [#tpu.dimension_semantics<parallel>, #tpu.dimension_semantics<parallel>], iteration_bounds = array<i64: 2, 2>, scalar_prefetch = 0 : i64, scratch_operands = 0 : i64, tpu.core_type = #tpu.core_type<tc>, window_params = [{transform_indices = @transform_0, window_bounds = array<i64: 1, 3, 12, 24>}, {transform_indices = @transform_1, window_bounds = array<i64: 1, 9, 24, 256>}, {transform_indices = @transform_2, window_bounds = array<i64: 1, 2, 10, 128>}]} {
    %c0 = arith.constant 0 : index
    %c0_0 = arith.constant 0 : index
    %c0_1 = arith.constant 0 : index
    %c0_2 = arith.constant 0 : index
    %0 = vector.load %arg2[%c0, %c0_0, %c0_1, %c0_2] : memref<1x3x12x24xf32, #tpu.memory_space<vmem>>, vector<1x1x12x24xf32>
    %1 = vector.shape_cast %0 : vector<1x1x12x24xf32> to vector<12x24xf32>
    %2 = arith.truncf %1 : vector<12x24xf32> to vector<12x24xbf16>
    %3 = vector.extract_strided_slice %2 {offsets = [0, 0], sizes = [10, 24], strides = [1, 1]} : vector<12x24xbf16> to vector<10x24xbf16>
    %c0_3 = arith.constant 0 : index
    %c0_4 = arith.constant 0 : index
    %c0_5 = arith.constant 0 : index
    %c0_6 = arith.constant 0 : index
    %4 = vector.load %arg3[%c0_3, %c0_4, %c0_5, %c0_6] : memref<1x9x24x256xbf16, #tpu.memory_space<vmem>>, vector<1x1x24x256xbf16>
    %5 = vector.shape_cast %4 : vector<1x1x24x256xbf16> to vector<24x256xbf16>
    %cst = arith.constant dense<0.000000e+00> : vector<10x256xf32>
    %6 = tpu.matmul %3, %5, %cst {dimension_numbers = #tpu.dot_dimension_numbers<[1], [0], [0], [1], [0, 0, 1, 1], [], []>} : vector<10x24xbf16>, vector<24x256xbf16>, vector<10x256xf32> -> vector<10x256xf32>
    %7 = vector.extract_strided_slice %2 {offsets = [1, 0], sizes = [10, 24], strides = [1, 1]} : vector<12x24xbf16> to vector<10x24xbf16>
    %c0_7 = arith.constant 0 : index
    %c1 = arith.constant 1 : index
    %c0_8 = arith.constant 0 : index
    %c0_9 = arith.constant 0 : index
    %8 = vector.load %arg3[%c0_7, %c1, %c0_8, %c0_9] : memref<1x9x24x256xbf16, #tpu.memory_space<vmem>>, vector<1x1x24x256xbf16>
    %9 = vector.shape_cast %8 : vector<1x1x24x256xbf16> to vector<24x256xbf16>
    %cst_10 = arith.constant dense<0.000000e+00> : vector<10x256xf32>
    %10 = tpu.matmul %7, %9, %cst_10 {dimension_numbers = #tpu.dot_dimension_numbers<[1], [0], [0], [1], [0, 0, 1, 1], [], []>} : vector<10x24xbf16>, vector<24x256xbf16>, vector<10x256xf32> -> vector<10x256xf32>
    %11 = arith.addf %6, %10 : vector<10x256xf32>
    %12 = vector.extract_strided_slice %2 {offsets = [2, 0], sizes = [10, 24], strides = [1, 1]} : vector<12x24xbf16> to vector<10x24xbf16>
    %c0_11 = arith.constant 0 : index
    %c2 = arith.constant 2 : index
    %c0_12 = arith.constant 0 : index
    %c0_13 = arith.constant 0 : index
    %13 = vector.load %arg3[%c0_11, %c2, %c0_12, %c0_13] : memref<1x9x24x256xbf16, #tpu.memory_space<vmem>>, vector<1x1x24x256xbf16>
    %14 = vector.shape_cast %13 : vector<1x1x24x256xbf16> to vector<24x256xbf16>
    %cst_14 = arith.constant dense<0.000000e+00> : vector<10x256xf32>
    %15 = tpu.matmul %12, %14, %cst_14 {dimension_numbers = #tpu.dot_dimension_numbers<[1], [0], [0], [1], [0, 0, 1, 1], [], []>} : vector<10x24xbf16>, vector<24x256xbf16>, vector<10x256xf32> -> vector<10x256xf32>
    %16 = arith.addf %11, %15 : vector<10x256xf32>
    %c0_15 = arith.constant 0 : index
    %c1_16 = arith.constant 1 : index
    %c0_17 = arith.constant 0 : index
    %c0_18 = arith.constant 0 : index
    %17 = vector.load %arg2[%c0_15, %c1_16, %c0_17, %c0_18] : memref<1x3x12x24xf32, #tpu.memory_space<vmem>>, vector<1x1x12x24xf32>
    %18 = vector.shape_cast %17 : vector<1x1x12x24xf32> to vector<12x24xf32>
    %19 = arith.truncf %18 : vector<12x24xf32> to vector<12x24xbf16>
    %20 = vector.extract_strided_slice %19 {offsets = [0, 0], sizes = [10, 24], strides = [1, 1]} : vector<12x24xbf16> to vector<10x24xbf16>
    %c0_19 = arith.constant 0 : index
    %c3 = arith.constant 3 : index
    %c0_20 = arith.constant 0 : index
    %c0_21 = arith.constant 0 : index
    %21 = vector.load %arg3[%c0_19, %c3, %c0_20, %c0_21] : memref<1x9x24x256xbf16, #tpu.memory_space<vmem>>, vector<1x1x24x256xbf16>
    %22 = vector.shape_cast %21 : vector<1x1x24x256xbf16> to vector<24x256xbf16>
    %cst_22 = arith.constant dense<0.000000e+00> : vector<10x256xf32>
    %23 = tpu.matmul %20, %22, %cst_22 {dimension_numbers = #tpu.dot_dimension_numbers<[1], [0], [0], [1], [0, 0, 1, 1], [], []>} : vector<10x24xbf16>, vector<24x256xbf16>, vector<10x256xf32> -> vector<10x256xf32>
    %24 = arith.addf %16, %23 : vector<10x256xf32>
    %25 = vector.extract_strided_slice %19 {offsets = [1, 0], sizes = [10, 24], strides = [1, 1]} : vector<12x24xbf16> to vector<10x24xbf16>
    %c0_23 = arith.constant 0 : index
    %c4 = arith.constant 4 : index
    %c0_24 = arith.constant 0 : index
    %c0_25 = arith.constant 0 : index
    %26 = vector.load %arg3[%c0_23, %c4, %c0_24, %c0_25] : memref<1x9x24x256xbf16, #tpu.memory_space<vmem>>, vector<1x1x24x256xbf16>
    %27 = vector.shape_cast %26 : vector<1x1x24x256xbf16> to vector<24x256xbf16>
    %cst_26 = arith.constant dense<0.000000e+00> : vector<10x256xf32>
    %28 = tpu.matmul %25, %27, %cst_26 {dimension_numbers = #tpu.dot_dimension_numbers<[1], [0], [0], [1], [0, 0, 1, 1], [], []>} : vector<10x24xbf16>, vector<24x256xbf16>, vector<10x256xf32> -> vector<10x256xf32>
    %29 = arith.addf %24, %28 : vector<10x256xf32>
    %30 = vector.extract_strided_slice %19 {offsets = [2, 0], sizes = [10, 24], strides = [1, 1]} : vector<12x24xbf16> to vector<10x24xbf16>
    %c0_27 = arith.constant 0 : index
    %c5 = arith.constant 5 : index
    %c0_28 = arith.constant 0 : index
    %c0_29 = arith.constant 0 : index
    %31 = vector.load %arg3[%c0_27, %c5, %c0_28, %c0_29] : memref<1x9x24x256xbf16, #tpu.memory_space<vmem>>, vector<1x1x24x256xbf16>
    %32 = vector.shape_cast %31 : vector<1x1x24x256xbf16> to vector<24x256xbf16>
    %cst_30 = arith.constant dense<0.000000e+00> : vector<10x256xf32>
    %33 = tpu.matmul %30, %32, %cst_30 {dimension_numbers = #tpu.dot_dimension_numbers<[1], [0], [0], [1], [0, 0, 1, 1], [], []>} : vector<10x24xbf16>, vector<24x256xbf16>, vector<10x256xf32> -> vector<10x256xf32>
    %34 = arith.addf %29, %33 : vector<10x256xf32>
    %c0_31 = arith.constant 0 : index
    %c2_32 = arith.constant 2 : index
    %c0_33 = arith.constant 0 : index
    %c0_34 = arith.constant 0 : index
    %35 = vector.load %arg2[%c0_31, %c2_32, %c0_33, %c0_34] : memref<1x3x12x24xf32, #tpu.memory_space<vmem>>, vector<1x1x12x24xf32>
    %36 = vector.shape_cast %35 : vector<1x1x12x24xf32> to vector<12x24xf32>
    %37 = arith.truncf %36 : vector<12x24xf32> to vector<12x24xbf16>
    %38 = vector.extract_strided_slice %37 {offsets = [0, 0], sizes = [10, 24], strides = [1, 1]} : vector<12x24xbf16> to vector<10x24xbf16>
    %c0_35 = arith.constant 0 : index
    %c6 = arith.constant 6 : index
    %c0_36 = arith.constant 0 : index
    %c0_37 = arith.constant 0 : index
    %39 = vector.load %arg3[%c0_35, %c6, %c0_36, %c0_37] : memref<1x9x24x256xbf16, #tpu.memory_space<vmem>>, vector<1x1x24x256xbf16>
    %40 = vector.shape_cast %39 : vector<1x1x24x256xbf16> to vector<24x256xbf16>
    %cst_38 = arith.constant dense<0.000000e+00> : vector<10x256xf32>
    %41 = tpu.matmul %38, %40, %cst_38 {dimension_numbers = #tpu.dot_dimension_numbers<[1], [0], [0], [1], [0, 0, 1, 1], [], []>} : vector<10x24xbf16>, vector<24x256xbf16>, vector<10x256xf32> -> vector<10x256xf32>
    %42 = arith.addf %34, %41 : vector<10x256xf32>
    %43 = vector.extract_strided_slice %37 {offsets = [1, 0], sizes = [10, 24], strides = [1, 1]} : vector<12x24xbf16> to vector<10x24xbf16>
    %c0_39 = arith.constant 0 : index
    %c7 = arith.constant 7 : index
    %c0_40 = arith.constant 0 : index
    %c0_41 = arith.constant 0 : index
    %44 = vector.load %arg3[%c0_39, %c7, %c0_40, %c0_41] : memref<1x9x24x256xbf16, #tpu.memory_space<vmem>>, vector<1x1x24x256xbf16>
    %45 = vector.shape_cast %44 : vector<1x1x24x256xbf16> to vector<24x256xbf16>
    %cst_42 = arith.constant dense<0.000000e+00> : vector<10x256xf32>
    %46 = tpu.matmul %43, %45, %cst_42 {dimension_numbers = #tpu.dot_dimension_numbers<[1], [0], [0], [1], [0, 0, 1, 1], [], []>} : vector<10x24xbf16>, vector<24x256xbf16>, vector<10x256xf32> -> vector<10x256xf32>
    %47 = arith.addf %42, %46 : vector<10x256xf32>
    %48 = vector.extract_strided_slice %37 {offsets = [2, 0], sizes = [10, 24], strides = [1, 1]} : vector<12x24xbf16> to vector<10x24xbf16>
    %c0_43 = arith.constant 0 : index
    %c8 = arith.constant 8 : index
    %c0_44 = arith.constant 0 : index
    %c0_45 = arith.constant 0 : index
    %49 = vector.load %arg3[%c0_43, %c8, %c0_44, %c0_45] : memref<1x9x24x256xbf16, #tpu.memory_space<vmem>>, vector<1x1x24x256xbf16>
    %50 = vector.shape_cast %49 : vector<1x1x24x256xbf16> to vector<24x256xbf16>
    %cst_46 = arith.constant dense<0.000000e+00> : vector<10x256xf32>
    %51 = tpu.matmul %48, %50, %cst_46 {dimension_numbers = #tpu.dot_dimension_numbers<[1], [0], [0], [1], [0, 0, 1, 1], [], []>} : vector<10x24xbf16>, vector<24x256xbf16>, vector<10x256xf32> -> vector<10x256xf32>
    %52 = arith.addf %47, %51 : vector<10x256xf32>
    %cst_47 = arith.constant -4.914000e-01 : f32
    %53 = vector.broadcast %cst_47 : f32 to vector<10x256xf32>
    %54 = arith.maximumf %52, %53 : vector<10x256xf32>
    %cst_48 = arith.constant 6.558000e-01 : f32
    %55 = vector.broadcast %cst_48 : f32 to vector<10x256xf32>
    %56 = arith.minimumf %54, %55 : vector<10x256xf32>
    %57 = vector.extract_strided_slice %56 {offsets = [0, 0], sizes = [10, 128], strides = [1, 1]} : vector<10x256xf32> to vector<10x128xf32>
    %c0_49 = arith.constant 0 : index
    %c0_50 = arith.constant 0 : index
    %c0_51 = arith.constant 0 : index
    %c0_52 = arith.constant 0 : index
    %58 = vector.load %arg4[%c0_49, %c0_50, %c0_51, %c0_52] : memref<1x2x10x128xf32, #tpu.memory_space<vmem>>, vector<1x1x10x128xf32>
    %59 = vector.shape_cast %58 : vector<1x1x10x128xf32> to vector<10x128xf32>
    %60 = vector.shape_cast %57 : vector<10x128xf32> to vector<1x1x10x128xf32>
    tpu.vector_store %arg4[%c0_49, %c0_50, %c0_51, %c0_52], %60 {strides = array<i32>} : memref<1x2x10x128xf32, #tpu.memory_space<vmem>>, vector<1x1x10x128xf32>,
    %61 = vector.extract_strided_slice %56 {offsets = [0, 128], sizes = [10, 128], strides = [1, 1]} : vector<10x256xf32> to vector<10x128xf32>
    %c0_53 = arith.constant 0 : index
    %c1_54 = arith.constant 1 : index
    %c0_55 = arith.constant 0 : index
    %c0_56 = arith.constant 0 : index
    %62 = vector.load %arg4[%c0_53, %c1_54, %c0_55, %c0_56] : memref<1x2x10x128xf32, #tpu.memory_space<vmem>>, vector<1x1x10x128xf32>
    %63 = vector.shape_cast %62 : vector<1x1x10x128xf32> to vector<10x128xf32>
    %64 = vector.shape_cast %61 : vector<10x128xf32> to vector<1x1x10x128xf32>
    tpu.vector_store %arg4[%c0_53, %c1_54, %c0_55, %c0_56], %64 {strides = array<i32>} : memref<1x2x10x128xf32, #tpu.memory_space<vmem>>, vector<1x1x10x128xf32>,
    return
  }
  func.func @transform_0(%arg0: i32, %arg1: i32) -> (i32, i32, i32, i32) {
    %c0_i32 = arith.constant 0 : i32
    %c0_i32_0 = arith.constant 0 : i32
    %c0_i32_1 = arith.constant 0 : i32
    return %arg1, %arg0, %c0_i32, %c0_i32_0 : i32, i32, i32, i32
  }
  func.func @transform_1(%arg0: i32, %arg1: i32) -> (i32, i32, i32, i32) {
    %c0_i32 = arith.constant 0 : i32
    %c0_i32_0 = arith.constant 0 : i32
    %c0_i32_1 = arith.constant 0 : i32
    %c0_i32_2 = arith.constant 0 : i32
    return %arg0, %c0_i32, %c0_i32_0, %c0_i32_1 : i32, i32, i32, i32
  }
  func.func @transform_2(%arg0: i32, %arg1: i32) -> (i32, i32, i32, i32) {
    %c0_i32 = arith.constant 0 : i32
    %c0_i32_0 = arith.constant 0 : i32
    %c0_i32_1 = arith.constant 0 : i32
    return %arg1, %arg0, %c0_i32, %c0_i32_0 : i32, i32, i32, i32
  }
}

</mosaic_0001>

<bundles_post_ra>
// kernel: tpu_custom_call.1
= control target key start
LH: loop header
LB: loop body
LE: loop exit
PB: predicated region body
PF: predicated region fallthrough
CT: control target
= control target key end

     0   :  { %7 = vsyncpa [#allocation3], 0  ;;  %s1669_s0 = inlined_call_operand.vmem [shape: f32[2,6,12,24], index: 0, kind: input, shape index: {}]   ;;  %s1670_s1 = inlined_call_operand.hbm [shape: bf16[2,9,24,256], index: 1, kind: input, shape index: {}]   ;;  %s1671_s2 = inlined_call_operand.vmem [shape: f32[2,4,10,128], index: 2, kind: output, shape index: {}]  }
   0x1   :  { %9 = vsyncpa [#allocation3 + $0x1], 0  ;;  %s1437_s9 = smov 0   ;;  %s1439_s10 = smov 0  }
   0x2   :  { %s1441_s11 = smov 0   ;;  %s1443_s12 = smov 0  }
   0x3   :  { %s1445_s13 = smov 0   ;;  %s1447_s14 = smov 0  }
   0x4   :  { %s1449_s15 = smov 0   ;;  %s1451_s16 = smov 0  }
   0x5 LB: > { %s1067_s17 = sadd.s32 4294967295, %s1416_s16   ;;  %s24_s18 = sadd.s32 1, %s1408_s14  ;;  %s1416_s16 = sphi %s1451_s16, %s15_s16   ;;  %s1412_s15 = sphi %s1449_s15, %s1680_s15   ;;  %s1408_s14 = sphi %s1447_s14, %s1679_s14   ;;  %s1404_s13 = sphi %s1445_s13, %s1678_s13   ;;  %s1400_s12 = sphi %s1443_s12, %s1677_s12   ;;  %s1396_s11 = sphi %s1441_s11, %s1676_s11   ;;  %s1392_s10 = sphi %s1439_s10, %s1675_s10   ;;  %s1388_s9 = sphi %s1437_s9, %s1674_s9  }
   0x6   : > { %p25_p0 = scmp.ge.s32.totalorder %s24_s18, 2  ;;  %s27_s19 = sadd.s32 1, %s1412_s15 }
   0x7   : > { %s62_s20 = sadd.s32 1, %s1396_s11  ;;  %p69_p1 = scmp.ne.s32.totalorder %s1396_s11, %s1392_s10 }
   0x8   : > { %s1682_s18 = smov (%p25_p0, %s24_s18), 0  ;;  %s1684_s19 = smov (!%p25_p0, %s27_s19), %s1412_s15 }
   0x9   : > { %p70_p2 = scmp.eq.s32.totalorder %s1416_s16, 0  ;;  %p75_p3 = scmp.ne.s32.totalorder %s1392_s10, %s1388_s9 }
   0xa   : > { %p29_p4 = scmp.ge.s32.totalorder %s1684_s19, 2  ;;  %p76_p5 = scmp.eq.s32.totalorder %s1067_s17, 0 }
   0xb   : > { %p71_p6 = por %p70_p2, %p69_p1  ;;  %p1207_p8 = scmp.lt.s32.totalorder %s1416_s16, 4 }
   0xc   : > { %s1686_s19 = smov (%p29_p4, %s1684_s19), 0  ;;  %p1488_p7 = por %p76_p5, %p75_p3 }
   0xd   : > { %s59_s22 = ssub.s32 %s1412_s15, %s1686_s19  ;;  %s141_s23 = sand.u32 1, %s1396_s11  }
   0xe   : > { %p60_p9 = scmp.eq.s32.totalorder %s59_s22, 0  ;;  %s1197_s24 = smul.u32 216, %s141_s23 }
   0xf   : > { %p1496_p10 = pnand %p1207_p8, %p71_p6  ;;  %s1198_s27 = smul.u32 3456, %s1412_s15 }
  0x10   : > { %s1501_s26 = scalar_select %p60_p9, %s1396_s11, %s62_s20  }
  0x11   : > { %s145_s28 = scalar_lea.vmem [#allocation2], %s1197_s24  ;;  %s1507_s4 = scalar_lea.hbm %s1670_s1, %s1198_s27 }
  0x12   : > { %s152_s29 = sshll.u32 %s145_s28, 4  ;;  %s1511_s5 = scalar_lea.sflag [#allocation3], %s141_s23  ;;  %s1509_s29 = int_to_ptr.vmem [resolvable:$true] %s152_s29 }
  0x13   : > { %s1320_s6 = scalar_lea.hbm %s1507_s4, 3456  ;;  %p1322_p12 = pneg %p1496_p10 }
  0x14   : > { %p1321_p11 = scmp.ne.s32.totalorder %s1507_s4, %s1320_s6  ;;  %s1325_s9 = scalar_lea.hbm %s1670_s1, 6912 }
  0x15   : > { %p1326_p1 = scmp.lt.u32.totalorder %s1507_s4, %s1670_s1  ;;  %p1327_p2 = scmp.lt.u32.totalorder %s1325_s9, %s1320_s6 }
  0x16   : > { %p1323_p13 = pnand %p1322_p12, %p1321_p11  ;;  %p1329_p4 = scmp.lt.u32.totalorder %s1320_s6, %s1507_s4 }
  0x17   : > { %p1328_p3 = por %p1327_p2, %p1326_p1 }
  0x18   : > { %p1324_p0 = pneg %p1323_p13 }
  0x19   : > { %p1330_p5 = por %p1329_p4, %p1328_p3 }
  0x1b   : > { %p1331_p6 = pnand %p1330_p5, %p1324_p0 }
  0x1d   : > { %1334 = shalt.err (!%p1331_p6)
}
  0x1e   : > { %s1335_s22 = scalar_lea.vmem %s1509_s29, 3456  ;;  %s1418_s23 = smov [#allocation2]  }
  0x1f   : > { %p1336_p8 = scmp.ne.s32.totalorder %s1509_s29, %s1335_s22  ;;  %s1340_s24 = sshll.u32 %s1418_s23, 4  ;;  %s1341_s24 = int_to_ptr.vmem [resolvable:$false] %s1340_s24 }
  0x20   : > { %s1342_s27 = scalar_lea.vmem %s1341_s24, 6912  ;;  %p1343_p13 = scmp.lt.s32.totalorder %s1509_s29, %s1341_s24 }
  0x21   : > { %p1338_p9 = pnand %p1336_p8, %p1322_p12  ;;  %p1344_p1 = scmp.lt.s32.totalorder %s1342_s27, %s1335_s22 }
  0x23   : > { %p1339_p11 = pneg %p1338_p9  ;;  %p1345_p2 = por %p1344_p1, %p1343_p13 }
  0x25   : > { %p1346_p3 = pnand %p1345_p2, %p1339_p11 }
  0x27   : > { %1349 = shalt.err (!%p1346_p3)
}
  0x28   : > { %s1419_s28 = smov 128   ;;  %s1420_s30 = smov 8  }
  0x29   : > { %1206 = dma.hbm_to_vmem [thread:$0]  (!%p1496_p10), %s1507_s4, 3456, %s1509_s29, %s1511_s5, %s1419_s28, %s1419_s28, %s1420_s30  }
  0x2a   : > { %p1072_p12 = scmp.ge.s32.totalorder %s1416_s16, 1  ;;  %p160_p0 = scmp.lt.s32.totalorder %s1416_s16, 5 }
  0x2c   : > { %p161_p4 = pnand %p1072_p12, %p160_p0 }
  0x2d   : > { %s166_s3 = sand.u32 (!%p161_p4), 1, %s1392_s10  }
  0x2e   : > { %164 = sbr.rel (%p161_p4) target bundleno = 343 (0x157), region = 28  ;;  %s167_s7 = scalar_lea.sflag (!%p161_p4), [#allocation3], %s166_s3 }
  0x2f   : > { %s1199_s6 = smul.u32 (!%p161_p4), 216, %s166_s3 }
  0x31   : > { %s1542_s8 = scalar_lea.vmem (!%p161_p4), [#allocation2], %s1199_s6 }
  0x35   : > { %1383 = dma.done.wait (%p1488_p7), %s167_s7, 3456  }
  0x36   : > { %1385 = vsyncadd (%p1488_p7), %s167_s7, 4294963840  ;;  %s206_s25 = smul.u32 3, %s1404_s13  ;;  %p207_p10 = scmp.lt.s32.totalorder %s1400_s12, 1  ;;  %v1421_v0 = vmov 0   ;;  %v1275_v1 = vld [vmem:[%s1542_s8 + $0x64] ss:$8 sps:$4 sm:$0xff]  }
  0x37   : > { %304 = vmatprep.mubr.bf16.mxu1 %v1421_v0  ;;  %603 = vmatprep.mubr.bf16.mxu0 %v1421_v0  ;;  %v1277_v2 = vld [vmem:[%s1542_s8 + $0x1c] ss:$8 sps:$4 sm:$0xff]   ;;  %vm265_vm0 = vcmask 1043456   ;;  %v1279_v3 = vld [vmem:[%s1542_s8 + $0x60] ss:$8 sps:$4 sm:$0xff]   ;;  %v1116_v5 = vld [vmem:[%s1542_s8 + $0x70] sm:$0xff] }
  0x38   : > { %s1688_s12 = smov (!%p207_p10, %s1400_s12), 1  ;;  %p209_p7 = scmp.lt.s32.totalorder %s206_s25, 5  ;;  %571 = vmatprep.subr.bf16.mxu0 %v1275_v1  ;;  %v1280_v4 = vld [vmem:[%s1542_s8 + $0x18] ss:$8 sps:$4 sm:$0xff]   ;;  %272 = vmatprep.subr.bf16.mxu1 %v1277_v2  ;;  %v1120_v6 = vcombine.high %v1116_v5, %v1116_v5  ;;  %v1081_v7 = vld [vmem:[%s1542_s8 + $0x28] sm:$0xff]  ;;  %v1119_v8 = vcombine.low %v1116_v5, %v1116_v5  ;;  %v234_v26 = vld [vmem:[%s1542_s8 + $0x10] sm:$0xff] }
  0x39   : > { %s1200_s21 = smul.u32 12, %s1688_s12  ;;  %572 = vmatpush1.bf16.msra.mxu0 %v1279_v3  ;;  %273 = vmatpush1.bf16.msra.mxu1 %v1280_v4  ;;  %v1085_v9 = vcombine.high %v1081_v7, %v1081_v7  ;;  %v1084_v10 = vcombine.low %v1081_v7, %v1081_v7  ;;  %v1287_v11 = vld [vmem:[%s1542_s8 + $0x7c] ss:$8 sps:$4 sm:$0xff]   ;;  %v1125_v21 = vld [vmem:[%s1542_s8 + $0x88] sm:$0xff]  ;;  %v1285_v29 = vld [vmem:[%s1542_s8 + $0x78] ss:$8 sps:$4 sm:$0xff]   ;;  %v1091_v35 = vcombine.high %v234_v26, %v234_v26 }
  0x3a   : > { %s1690_s25 = smov (!%p209_p7, %s206_s25), 5  ;;  %1121 = vmatprep.subr.msk.bf16.mxu0 %vm265_vm0, %v1120_v6  ;;  %v566_v13 = vsel %vm265_vm0, %v1119_v8, 0  ;;  %v1290_v20 = vld [vmem:[%s1542_s8 + $0x4] ss:$8 sps:$4 sm:$0xff]   ;;  %vm261_vm1 = vcmask 195584   ;;  %v1129_v31 = vcombine.high %v1125_v21, %v1125_v21  ;;  %v1128_v32 = vcombine.low %v1125_v21, %v1125_v21  ;;  %v1145_v56 = vld [vmem:[%s1542_s8 + $0xb8] sm:$0xff] }
  0x3b   : > { %s1073_s29 = sshll.u32 %s1690_s25, 1  ;;  %1086 = vmatprep.subr.msk.bf16.mxu1 %vm265_vm0, %v1085_v9  ;;  %v267_v17 = vsel %vm265_vm0, %v1084_v10, 0  ;;  %v1288_v30 = vld [vmem:[%s1542_s8] ss:$8 sps:$4 sm:$0xff]   ;;  %v1090_v36 = vcombine.low %v234_v26, %v234_v26  ;;  %v1297_v37 = vld [vmem:[%s1542_s8 + $0x94] ss:$8 sps:$4 sm:$0xff]   ;;  %v1149_v62 = vcombine.high %v1145_v56, %v1145_v56  ;;  %v1148_v63 = vcombine.low %v1145_v56, %v1145_v56 }
  0x3c   : > { %s213_s4 = sadd.s32 %s1200_s21, %s1073_s29  ;;  %v643_v38 = vsel %vm265_vm0, %v1128_v32, 0  ;;  %v1300_v40 = vld [vmem:[%s1542_s8 + $0x34] ss:$8 sps:$4 sm:$0xff]   ;;  %v1136_v41 = vld [vmem:[%s1542_s8 + $0xa0] sm:$0xff]  ;;  %v1295_v44 = vld [vmem:[%s1542_s8 + $0x90] ss:$8 sps:$4 sm:$0xff]  }
  0x3d   : > { %s1074_s5 = sshll.u32 %s213_s4, 3  ;;  %574 = vmatpush1.bf16.msra.mxu0 %v566_v13  ;;  %275 = vmatpush1.bf16.msra.mxu1 %v267_v17  ;;  %v333_v39 = vsel %vm265_vm0, %v1090_v36, 0  ;;  %v1096_v42 = vld [vmem:[%s1542_s8 + $0x40] sm:$0xff]  ;;  %v1298_v45 = vld [vmem:[%s1542_s8 + $0x30] ss:$8 sps:$4 sm:$0xff]   ;;  %v1140_v46 = vcombine.high %v1136_v41, %v1136_v41  ;;  %v1139_v47 = vcombine.low %v1136_v41, %v1136_v41  ;;  %v803_v4 = vsel %vm265_vm0, %v1148_v63, 0 }
  0x3e   : > { %s1565_s20 = scalar_lea.vmem %s1669_s0, %s1074_s5  ;;  %648 = vmatprep.subr.bf16.mxu0 %v1287_v11  ;;  %338 = vmatprep.subr.bf16.mxu1 %v1290_v20  ;;  %v1100_v48 = vcombine.high %v1096_v42, %v1096_v42  ;;  %v1099_v49 = vcombine.low %v1096_v42, %v1096_v42  ;;  %v1307_v52 = vld [vmem:[%s1542_s8 + $0xac] ss:$8 sps:$4 sm:$0xff]   ;;  %v1107_v57 = vld [vmem:[%s1542_s8 + $0x58] sm:$0xff]  ;;  %v1305_v60 = vld [vmem:[%s1542_s8 + $0xa8] ss:$8 sps:$4 sm:$0xff]   ;;  %s1075_s22 = sshll.u32 %s1404_s13, 1 }
  0x3f   : > { %v229_v12 = vld [vmem:[%s1565_s20] sm:$0xff]  ;;  %v230_v14 = vld [vmem:[%s1565_s20 + $0x8] sm:$0xf]  ;;  %v1103_v15 = vld [vmem:[%s1565_s20 + $0x10] sm:$0xff]  ;;  %v722_v50 = vsel %vm265_vm0, %v1139_v47, 0  ;;  %v1111_v1 = vcombine.high %v1107_v57, %v1107_v57  ;;  %v1110_v2 = vcombine.low %v1107_v57, %v1107_v57  ;;  %p220_p5 = scmp.lt.s32.totalorder %s1075_s22, 3 }
  0x40   : > { %v1104_v16 = vld [vmem:[%s1565_s20 + $0x18] sm:$0xf]  ;;  %v1576_v18 = vpack.c.bf16 %v230_v14, %v229_v12  ;;  %v406_v51 = vsel %vm265_vm0, %v1099_v49, 0  ;;  %v1310_v53 = vld [vmem:[%s1542_s8 + $0x4c] ss:$8 sps:$4 sm:$0xff]   ;;  %s1077_s24 = sshll.u32 %s1688_s12, 3 }
  0x41   : > { %v1578_v19 = vpack.c.bf16 %v1104_v16, %v1103_v15  ;;  %v1132_v54 = vld [vmem:[%s1565_s20 + $0x20] sm:$0xff]  ;;  %v1133_v55 = vld [vmem:[%s1565_s20 + $0x28] sm:$0xf]  ;;  %v485_v5 = vsel %vm265_vm0, %v1110_v2, 0  ;;  %s1692_s22 = smov (!%p220_p5, %s1075_s22), 3 }
  0x42   : > { %v240_v22 = vshrl.u32 %v1576_v18, 16  ;;  %v242_v23 = vshll.u32 %v1576_v18, 16  ;;  %v386_v58 = vrot.slane %v1576_v18, 1  ;;  %v698_v59 = vpack.c.bf16 %v1133_v55, %v1132_v54  ;;  %v1308_v61 = vld [vmem:[%s1542_s8 + $0x48] ss:$8 sps:$4 sm:$0xff]   ;;  %s1076_s23 = sshll.u32 %s1692_s22, 1 }
  0x43   : > { %v541_v24 = vshrl.u32 %v1578_v19, 16  ;;  %v543_v25 = vshll.u32 %v1578_v19, 16  ;;  %v623_v43 = vrot.slane %v1578_v19, 1  ;;  %v1317_v6 = vld [vmem:[%s1542_s8 + $0xc4] ss:$8 sps:$4 sm:$0xff]   ;;  %v1154_v9 = vld [vmem:[%s1542_s8 + $0xd0] sm:$0xff]  ;;  %s224_s27 = sadd.s32 %s1077_s24, %s1076_s23 }
  0x44   : > { %v244_v27 = vrot.slane %v242_v23, 1  ;;  %v780_v3 = vshll.u32 %v698_v59, 16  ;;  %v778_v7 = vshrl.u32 %v698_v59, 16  ;;  %v1315_v11 = vld [vmem:[%s1542_s8 + $0xc0] ss:$8 sps:$4 sm:$0xff]   ;;  %v1158_v12 = vcombine.high %v1154_v9, %v1154_v9  ;;  %s1078_s28 = sshll.u32 %s224_s27, 3 }
  0x45   : > { %v545_v28 = vrot.slane %v543_v25, 1  ;;  %v1157_v13 = vcombine.low %v1154_v9, %v1154_v9  ;;  %v860_v15 = vrot.slane %v698_v59, 1  ;;  %s226_s3 = scalar_lea.vmem %s1671_s2, %s1078_s28 }
  0x46   : > { %v245_v33 = vor.u32 %v244_v27, %v240_v22  ;;  %v782_v8 = vrot.slane %v780_v3, 1 }
  0x47   : > { %v546_v34 = vor.u32 %v545_v28, %v541_v24  ;;  %v880_v14 = vsel %vm265_vm0, %v1157_v13, 0 }
  0x48   : > { %1087 = vmatmul.mubr.msk.bf16.vlgmr.msra.gmra.mrb[0].mxu1 %vm261_vm1, %v245_v33  ;;  %v783_v10 = vor.u32 %v782_v8, %v778_v7 }
  0x49   : > { %1122 = vmatmul.mubr.msk.bf16.vlgmr.msra.gmra.mrb[0].mxu0 %vm261_vm1, %v546_v34  ;;  %339 = vmatpush1.bf16.msra.mxu1 %v1288_v30 }
  0x4a   : > { %649 = vmatpush1.bf16.msra.mxu0 %v1285_v29  ;;  %1092 = vmatprep.subr.msk.bf16.mxu1 %vm265_vm0, %v1091_v35 }
  0x4b   : > { %1130 = vmatprep.subr.msk.bf16.mxu0 %vm265_vm0, %v1129_v31  ;;  %370 = vmatprep.mubr.bf16.mxu1 %v1421_v0 }
  0x4c   : > { %680 = vmatprep.mubr.bf16.mxu0 %v1421_v0 }
  0x4d   : > { %341 = vmatpush1.bf16.msra.mxu1 %v333_v39 }
  0x4e   : > { %651 = vmatpush1.bf16.msra.mxu0 %v643_v38  ;;  %411 = vmatprep.subr.bf16.mxu1 %v1300_v40 }
  0x4f   : > { %727 = vmatprep.subr.bf16.mxu0 %v1297_v37 }
  0x54   : > { %1093 = vmatmul.mubr.msk.bf16.vlgmr.msra.gmra.mrb[0].mxu1 %vm261_vm1, %v1576_v18 }
  0x55   : > { %1131 = vmatmul.mubr.msk.bf16.vlgmr.msra.gmra.mrb[0].mxu0 %vm261_vm1, %v623_v43  ;;  %412 = vmatpush1.bf16.msra.mxu1 %v1298_v45 }
  0x56   : > { %728 = vmatpush1.bf16.msra.mxu0 %v1295_v44  ;;  %1101 = vmatprep.subr.msk.bf16.mxu1 %vm265_vm0, %v1100_v48 }
  0x57   : > { %1141 = vmatprep.subr.msk.bf16.mxu0 %vm265_vm0, %v1140_v46  ;;  %443 = vmatprep.mubr.bf16.mxu1 %v1421_v0 }
  0x58   : > { %759 = vmatprep.mubr.bf16.mxu0 %v1421_v0 }
  0x59   : > { %414 = vmatpush1.bf16.msra.mxu1 %v406_v51 }
  0x5a   : > { %730 = vmatpush1.bf16.msra.mxu0 %v722_v50  ;;  %490 = vmatprep.subr.bf16.mxu1 %v1310_v53 }
  0x5b   : > { %808 = vmatprep.subr.bf16.mxu0 %v1307_v52 }
  0x60   : > { %1102 = vmatmul.mubr.msk.bf16.vlgmr.msra.gmra.mrb[0].mxu1 %vm261_vm1, %v386_v58 }
  0x61   : > { %1142 = vmatmul.mubr.msk.bf16.vlgmr.msra.gmra.mrb[0].mxu0 %vm261_vm1, %v698_v59  ;;  %491 = vmatpush1.bf16.msra.mxu1 %v1308_v61 }
  0x62   : > { %809 = vmatpush1.bf16.msra.mxu0 %v1305_v60  ;;  %1112 = vmatprep.subr.msk.bf16.mxu1 %vm265_vm0, %v1111_v1 }
  0x63   : > { %1150 = vmatprep.subr.msk.bf16.mxu0 %vm265_vm0, %v1149_v62  ;;  %522 = vmatprep.mubr.bf16.mxu1 %v1421_v0 }
  0x64   : > { %840 = vmatprep.mubr.bf16.mxu0 %v1421_v0 }
  0x65   : > { %493 = vmatpush1.bf16.msra.mxu1 %v485_v5 }
  0x66   : > { %811 = vmatpush1.bf16.msra.mxu0 %v803_v4 }
  0x67   : > { %885 = vmatprep.subr.bf16.mxu0 %v1317_v6 }
  0x6c   : > { %1113 = vmatmul.mubr.msk.bf16.vlgmr.msra.gmra.mrb[0].mxu1 %vm261_vm1, %v1578_v19 }
  0x6d   : > { %1151 = vmatmul.mubr.msk.bf16.vlgmr.msra.gmra.mrb[0].mxu0 %vm261_vm1, %v783_v10 }
  0x6e   : > { %886 = vmatpush1.bf16.msra.mxu0 %v1315_v11  ;;  %917 = vmatprep.mubr.bf16.mxu0 %v1421_v0 }
  0x6f   : > { %1159 = vmatprep.subr.msk.bf16.mxu0 %vm265_vm0, %v1158_v12 }
  0x72   : > { %888 = vmatpush1.bf16.msra.mxu0 %v880_v14 }
  0x79   : > { %1160 = vmatmul.mubr.msk.bf16.vlgmr.msra.gmra.mrb[0].mxu0 %vm261_vm1, %v860_v15 }
 0x13f   : > { %v524_v16 = vpop.f32.mrb[0].mxu1 }
 0x140   : > { %v526_v17 = vpop.f32.mrb[1].mxu1 }
 0x141   : > { %v528_v18 = vpop.f32.mrb[2].mxu1 }
 0x142   : > { %v530_v19 = vpop.f32.mrb[3].mxu1 }
 0x14c   : > { %v919_v20 = vpop.f32.mrb[0].mxu0 }
 0x14d   : > { %v1165_v0 = vadd.f32 %v919_v20, %v524_v16  ;;  %v921_v21 = vpop.f32.mrb[1].mxu0 }
 0x14e   : > { %v1166_v22 = vadd.f32 %v921_v21, %v526_v17  ;;  %v923_v23 = vpop.f32.mrb[2].mxu0 }
 0x14f   : > { %v932_v24 = vmax.f32 %v1165_v0, -0.4914  ;;  %v1167_v25 = vadd.f32 %v923_v23, %v528_v18  ;;  %v925_v26 = vpop.f32.mrb[3].mxu0 }
 0x150   : > { %v933_v27 = vmax.f32 %v1166_v22, -0.4914  ;;  %v1168_v28 = vadd.f32 %v925_v26, %v530_v19 }
 0x151   : > { %v936_v29 = vmin.f32 %v932_v24, 0.6558  ;;  %v934_v30 = vmax.f32 %v1167_v25, -0.4914 }
 0x152   : > { %v937_v31 = vmin.f32 %v933_v27, 0.6558  ;;  %v935_v32 = vmax.f32 %v1168_v28, -0.4914 }
 0x153   : > { %940 = vst [vmem:[%s226_s3] sm:$0xff] %v936_v29  ;;  %v938_v33 = vmin.f32 %v934_v30, 0.6558 }
 0x154   : > { %1161 = vst [vmem:[%s226_s3 + $0x10] sm:$0xff] %v937_v31  ;;  %v939_v34 = vmin.f32 %v935_v32, 0.6558 }
 0x155   : > { %941 = vst [vmem:[%s226_s3 + $0x8] sm:$0x3] %v938_v33 }
 0x156   : > { %1162 = vst [vmem:[%s226_s3 + $0x18] sm:$0x3] %v939_v34 }
 0x157 PF: > { %s15_s16 = sadd.s32 1, %s1416_s16   ;;  %s1674_s9 = smov %s1392_s10 }
 0x158   : > { %p12_p6 = scmp.ge.s32.totalorder %s15_s16, 6   ;;  %s1675_s10 = smov %s1396_s11 }
 0x159   : > { %s1676_s11 = smov %s1501_s26  ;;  %s1677_s12 = smov %s1408_s14 }
 0x15a   : > { %s1678_s13 = smov %s1412_s15  ;;  %s1679_s14 = smov %s1682_s18 }
 0x15b   : > { %s1680_s15 = smov %s1686_s19  ;;  %14 = sbr.rel (!%p12_p6) target bundleno = 5 (0x5), region = 82 }
 0x162   :  { %977 = vsyncpa [#allocation3], 1 }
 0x163   :  { %979 = vsyncpa [#allocation3 + $0x1], 1 }

</bundles_post_ra>
